<compile_context>
chip_gen: v6e
topology: v6e:2x2x1
jax: 0.10.0
libtpu: 0.0.40
codegen_flags: <defaults>
</compile_context>

<pallas_src>
import functools

import jax
import jax.numpy as jnp
from jax.experimental import pallas as pl
from jax.experimental.pallas import tpu as pltpu


def _l2n_kernel(x_ref, o_ref, *, eps):
    # block: (Bt, C, HW_TILE); reduce over the channel axis (axis=1).
    x = x_ref[...]
    xf = x if x.dtype == jnp.float32 else x.astype(jnp.float32)
    sq_sum = jnp.sum(xf * xf, axis=1, keepdims=True)            # (Bt, 1, HW_TILE)
    # One (exact) reciprocal per spatial column; matches x / (norm + eps).
    inv = pl.reciprocal(jnp.sqrt(sq_sum) + eps, approx=False)
    o_ref[...] = (xf * inv).astype(o_ref.dtype)


def _largest_divisor_leq(n, cap):
    for cand in range(min(n, cap), 0, -1):
        if n % cand == 0:
            return cand
    return 1


def l2n(x, eps=1e-6):
    """x: (B, C, H, W) -> x / (||x||_2 over C + eps), matching PyTorch L2N."""
    B, C, H, W = x.shape
    HW = H * W
    x2 = x.reshape(B, C, HW)

    itemsize = jnp.dtype(x.dtype).itemsize
    # Sublane rows per vreg for this dtype: 8 (f32), 16 (bf16), 32 (8-bit).
    sublane = 8 * (4 // itemsize)
    # If C under-fills the sublane axis (e.g. C=4 f32), pack several batch
    # elements per block to restore per-step efficiency.
    bt = _largest_divisor_leq(B, max(1, sublane // C))

    # Lane (HW) tile: multiple of 128, sized so 2 buffers x (in + out) tiles
    # stay well under the scoped-VMEM default on every generation (incl. v7x's
    # 64 MiB physical / 32 MiB scoped budget).
    budget_bytes = 8 * 1024 * 1024
    per_col_bytes = 4 * bt * C * itemsize         # 2 bufs x (in + out) per lane col
    hw_tile = (budget_bytes // per_col_bytes) // 128 * 128
    hw_tile = max(128, min(2048, hw_tile))
    hw_tile = min(hw_tile, pl.cdiv(HW, 128) * 128)

    hw_padded = pl.cdiv(HW, hw_tile) * hw_tile
    if hw_padded != HW:
        # Pad spatial columns so stores stay lane-dense / unmasked; padded
        # columns normalize to exactly 0 and are sliced off afterwards.
        x2 = jnp.pad(x2, ((0, 0), (0, 0), (0, hw_padded - HW)))

    grid = (B // bt, hw_padded // hw_tile)
    spec = pl.BlockSpec((bt, C, hw_tile), lambda b, s: (b, 0, s))

    out = pl.pallas_call(
        functools.partial(_l2n_kernel, eps=float(eps)),
        out_shape=jax.ShapeDtypeStruct((B, C, hw_padded), x.dtype),
        grid_spec=pltpu.PrefetchScalarGridSpec(
            num_scalar_prefetch=0,
            grid=grid,
            in_specs=[spec],
            out_specs=spec,
        ),
        compiler_params=pltpu.CompilerParams(
            dimension_semantics=("parallel", "parallel"),
        ),
    )(x2)

    if hw_padded != HW:
        out = out[:, :, :HW]
    return out.reshape(B, C, H, W)


def _ref_l2n(x, eps=1e-6):
    xf = x.astype(jnp.float32)
    norm = jnp.sqrt(jnp.sum(xf * xf, axis=1, keepdims=True))
    return (xf / (norm + eps)).astype(x.dtype)


if __name__ == "__main__":
    key = jax.random.PRNGKey(0)

    # Small shape consistent with the module (B=2, C=4, 16x16 spatial).
    x = jax.random.normal(key, (2, 4, 16, 16), dtype=jnp.float32)
    y = jax.block_until_ready(l2n(x))
    assert y.shape == x.shape and y.dtype == x.dtype
    assert jnp.allclose(y, _ref_l2n(x), atol=1e-5, rtol=1e-5)

    # Non-multiple-of-128 spatial extent (7x7=49) exercises the lane-padding path.
    x2 = jax.random.normal(jax.random.PRNGKey(1), (2, 8, 7, 7), dtype=jnp.float32)
    y2 = jax.block_until_ready(l2n(x2))
    assert y2.shape == x2.shape and y2.dtype == x2.dtype
    assert jnp.allclose(y2, _ref_l2n(x2), atol=1e-5, rtol=1e-5)

    print("KERNEL_OK")
</pallas_src>

<mosaic_0001>
module attributes {stable_mosaic.version = 11 : i64} {
  func.func @_l2n_kernel(%arg0: i32, %arg1: i32, %arg2: memref<2x4x256xf32, #tpu.memory_space<vmem>>, %arg3: memref<2x4x256xf32, #tpu.memory_space<vmem>>) attributes {dimension_semantics = [#tpu.dimension_semantics<parallel>, #tpu.dimension_semantics<parallel>], iteration_bounds = array<i64: 1, 1>, scalar_prefetch = 0 : i64, scratch_operands = 0 : i64, tpu.core_type = #tpu.core_type<tc>, window_params = [{transform_indices = @transform_0, window_bounds = array<i64: 2, 4, 256>}, {transform_indices = @transform_1, window_bounds = array<i64: 2, 4, 256>}]} {
    %c0 = arith.constant 0 : index
    %c0_0 = arith.constant 0 : index
    %c0_1 = arith.constant 0 : index
    %0 = vector.load %arg2[%c0, %c0_0, %c0_1] : memref<2x4x256xf32, #tpu.memory_space<vmem>>, vector<2x4x256xf32>
    %1 = arith.mulf %0, %0 : vector<2x4x256xf32>
    %cst = arith.constant dense<0.000000e+00> : vector<2x256xf32>
    %2 = vector.multi_reduction <add>, %1, %cst [1] : vector<2x4x256xf32> to vector<2x256xf32>
    %3 = vector.shape_cast %2 : vector<2x256xf32> to vector<2x1x256xf32>
    %4 = math.sqrt %3 : vector<2x1x256xf32>
    %cst_2 = arith.constant 9.99999997E-7 : f32
    %5 = vector.broadcast %cst_2 : f32 to vector<2x1x256xf32>
    %6 = arith.addf %4, %5 : vector<2x1x256xf32>
    %7 = tpu.reciprocal %6 : vector<2x1x256xf32> -> vector<2x1x256xf32>
    %8 = vector.broadcast %7 : vector<2x1x256xf32> to vector<2x4x256xf32>
    %9 = arith.mulf %0, %8 : vector<2x4x256xf32>
    %c0_3 = arith.constant 0 : index
    %c0_4 = arith.constant 0 : index
    %c0_5 = arith.constant 0 : index
    %10 = vector.load %arg3[%c0_3, %c0_4, %c0_5] : memref<2x4x256xf32, #tpu.memory_space<vmem>>, vector<2x4x256xf32>
    tpu.vector_store %arg3[%c0_3, %c0_4, %c0_5], %9 {strides = array<i32>} : memref<2x4x256xf32, #tpu.memory_space<vmem>>, vector<2x4x256xf32>,
    return
  }
  func.func @transform_0(%arg0: i32, %arg1: i32) -> (i32, i32, i32) {
    %c0_i32 = arith.constant 0 : i32
    %c0_i32_0 = arith.constant 0 : i32
    return %arg0, %c0_i32, %arg1 : i32, i32, i32
  }
  func.func @transform_1(%arg0: i32, %arg1: i32) -> (i32, i32, i32) {
    %c0_i32 = arith.constant 0 : i32
    %c0_i32_0 = arith.constant 0 : i32
    return %arg0, %c0_i32, %arg1 : i32, i32, i32
  }
}

</mosaic_0001>

<bundles_post_ra>
// kernel: tpu_custom_call.1
= control target key start
LH: loop header
LB: loop body
LE: loop exit
PB: predicated region body
PF: predicated region fallthrough
CT: control target
= control target key end

     0   :  { %6 = vsyncpa [#allocation3], 0  ;;  %s230_s0 = inlined_call_operand.hbm [shape: f32[2,4,256], index: 0, kind: input, shape index: {}]   ;;  %s231_s1 = inlined_call_operand.hbm [shape: f32[2,4,256], index: 1, kind: output, shape index: {}]  }
   0x1   :  { %7 = vsyncpa [#allocation4], 0  ;;  %s191_s6 = smov [#allocation2]  }
   0x2   :  { %s13_s7 = sshll.u32 %s191_s6, 4  ;;  %s14_s7 = int_to_ptr.vmem [resolvable:$true] %s13_s7 }
   0x3   :  { %s155_s8 = scalar_lea.vmem %s14_s7, 256  ;;  %p160_p1 = scmp.lt.s32.totalorder %s14_s7, %s14_s7 }
   0x4   :  { %p156_p0 = scmp.ne.s32.totalorder %s14_s7, %s155_s8  ;;  %p161_p2 = scmp.lt.s32.totalorder %s155_s8, %s155_s8 }
   0x6   :  { %p162_p3 = por %p161_p2, %p160_p1 }
   0x8   :  { %p163_p4 = pnand %p162_p3, %p156_p0 }
   0xa   :  { %166 = shalt.err (!%p163_p4)
}
   0xb   :  { %s192_s9 = smov 128   ;;  %s193_s10 = smov 8  }
   0xc   :  { %19 = dma.hbm_to_vmem [thread:$0]  %s230_s0, 256, %s14_s7, [#allocation3], %s192_s9, %s192_s9, %s193_s10  }
   0xd   :  { %187 = dma.done.wait [#allocation3], 256  }
   0xe   :  { %188 = vsyncadd [#allocation3], 4294967040  ;;  %v211_v0 = vld [vmem:[#allocation2] sm:$0xff]  ;;  %vm33_vm0 = vcmask 1043456   ;;  %v213_v1 = vld [vmem:[#allocation2 + $0x8] sm:$0xff]  ;;  %s194_s0 = smov [#allocation5]  }
   0xf   :  { %v25_v2 = vmul.f32 %v211_v0, %v211_v0  ;;  %v26_v3 = vmul.f32 %v213_v1, %v213_v1  ;;  %s115_s13 = sshll.u32 %s194_s0, 4  ;;  %s116_s13 = int_to_ptr.vmem [resolvable:$true] %s115_s13 }
  0x10   :  { %s167_s14 = scalar_lea.vmem %s116_s13, 256  ;;  %p172_p6 = scmp.lt.s32.totalorder %s116_s13, %s116_s13 }
  0x11   :  { %v29_v4 = vcombine.high %v25_v2, %v25_v2  ;;  %v34_v5 = vsel %vm33_vm0, %v25_v2, 0.0  ;;  %v30_v6 = vcombine.high %v26_v3, %v26_v3  ;;  %v48_v7 = vsel %vm33_vm0, %v26_v3, 0.0  ;;  %p168_p5 = scmp.ne.s32.totalorder %s116_s13, %s167_s14  ;;  %p173_p7 = scmp.lt.s32.totalorder %s167_s14, %s167_s14 }
  0x12   :  { %v35_v8 = vrot.slane %v34_v5, 4  ;;  %v49_v9 = vrot.slane %v48_v7, 4 }
  0x13   :  { %v41_v10 = vsel %vm33_vm0, %v29_v4, 0.0  ;;  %v55_v11 = vsel %vm33_vm0, %v30_v6, 0.0  ;;  %p174_p8 = por %p173_p7, %p172_p6 }
  0x14   :  { %v36_v12 = vadd.f32 %v35_v8, %v34_v5  ;;  %v42_v13 = vrot.slane %v41_v10, 4  ;;  %v50_v14 = vadd.f32 %v49_v9, %v48_v7  ;;  %v56_v15 = vrot.slane %v55_v11, 4 }
  0x15   :  { %p175_p9 = pnand %p174_p8, %p168_p5 }
  0x16   :  { %v37_v16 = vrot.slane %v36_v12, 2  ;;  %v43_v17 = vadd.f32 %v42_v13, %v41_v10  ;;  %v51_v18 = vrot.slane %v50_v14, 2  ;;  %v57_v19 = vadd.f32 %v56_v15, %v55_v11 }
  0x18   :  { %v38_v20 = vadd.f32 %v37_v16, %v36_v12  ;;  %v44_v21 = vrot.slane %v43_v17, 2  ;;  %v52_v22 = vadd.f32 %v51_v18, %v50_v14  ;;  %v58_v23 = vrot.slane %v57_v19, 2 }
  0x1a   :  { %v39_v24 = vrot.slane %v38_v20, 1  ;;  %v45_v25 = vadd.f32 %v44_v21, %v43_v17  ;;  %v53_v26 = vrot.slane %v52_v22, 1  ;;  %v59_v27 = vadd.f32 %v58_v23, %v57_v19 }
  0x1c   :  { %v40_v28 = vadd.f32 %v39_v24, %v38_v20  ;;  %v46_v29 = vrot.slane %v45_v25, 1  ;;  %v54_v30 = vadd.f32 %v53_v26, %v52_v22  ;;  %v60_v31 = vrot.slane %v59_v27, 1 }
  0x1e   :  { %v47_v32 = vadd.f32 %v46_v29, %v45_v25  ;;  %131 = vrsqrt.f32 %v40_v28  ;;  %v61_v33 = vadd.f32 %v60_v31, %v59_v27  ;;  %vm64_vm1 = vcmp.eq.f32.partialorder %v40_v28, inf }
  0x1f   :  { %133 = vrsqrt.f32 %v54_v30  ;;  %vm66_vm2 = vcmp.eq.f32.partialorder %v40_v28, 0.0  ;;  %v67_v35 = vand.u32 2147483648, %v40_v28  ;;  %vm78_vm4 = vcmp.eq.f32.partialorder %v54_v30, inf }
  0x20   :  { %135 = vrsqrt.f32 %v47_v32  ;;  %vm71_vm3 = vcmp.eq.f32.partialorder %v47_v32, inf  ;;  %v81_v38 = vand.u32 2147483648, %v54_v30  ;;  %vm73_vm5 = vcmp.eq.f32.partialorder %v47_v32, 0.0 }
  0x21   :  { %137 = vrsqrt.f32 %v61_v33  ;;  %v74_v40 = vand.u32 2147483648, %v47_v32  ;;  %vm80_vm6 = vcmp.eq.f32.partialorder %v54_v30, 0.0  ;;  %vm85_vm7 = vcmp.eq.f32.partialorder %v61_v33, inf }
  0x22   :  { %v88_v45 = vand.u32 2147483648, %v61_v33  ;;  %vm87_vm8 = vcmp.eq.f32.partialorder %v61_v33, 0.0 }
  0x2b   :  { %v132_v34 = vpop.eup %131 }
  0x2c   :  { %v134_v36 = vpop.eup %133  ;;  %v63_v37 = vmul.f32 %v132_v34, %v40_v28 }
  0x2d   :  { %v136_v39 = vpop.eup %135  ;;  %v77_v41 = vmul.f32 %v134_v36, %v54_v30 }
  0x2e   :  { %v138_v42 = vpop.eup %137  ;;  %v65_v43 = vsel %vm64_vm1, %v40_v28, %v63_v37  ;;  %v70_v44 = vmul.f32 %v136_v39, %v47_v32 }
  0x2f   :  { %v68_v46 = vsel %vm66_vm2, %v67_v35, %v65_v43  ;;  %v79_v47 = vsel %vm78_vm4, %v54_v30, %v77_v41  ;;  %v84_v48 = vmul.f32 %v138_v42, %v61_v33 }
  0x30   :  { %v72_v49 = vsel %vm71_vm3, %v47_v32, %v70_v44  ;;  %v90_v50 = vadd.f32 1e-06, %v68_v46  ;;  %v82_v51 = vsel %vm80_vm6, %v81_v38, %v79_v47 }
  0x31   :  { %v75_v52 = vsel %vm73_vm5, %v74_v40, %v72_v49  ;;  %v86_v53 = vsel %vm85_vm7, %v61_v33, %v84_v48  ;;  %v92_v54 = vadd.f32 1e-06, %v82_v51 }
  0x32   :  { %v91_v55 = vadd.f32 1e-06, %v75_v52  ;;  %139 = vrcp.f32 %v90_v50  ;;  %v89_v56 = vsel %vm87_vm8, %v88_v45, %v86_v53 }
  0x33   :  { %v93_v57 = vadd.f32 1e-06, %v89_v56  ;;  %141 = vrcp.f32 %v92_v54 }
  0x34   :  { %143 = vrcp.f32 %v91_v55 }
  0x35   :  { %145 = vrcp.f32 %v93_v57 }
  0x3f   :  { %v140_v58 = vpop.eup %139 }
  0x40   :  { %v142_v59 = vpop.eup %141 }
  0x41   :  { %v144_v60 = vpop.eup %143 }
  0x42   :  { %v146_v61 = vpop.eup %145  ;;  %v102_v62 = vcombine.low %v140_v58, %v144_v60 }
  0x43   :  { %v103_v63 = vcombine.low %v142_v59, %v146_v61 }
  0x44   :  { %v106_v2 = vmul.f32 %v102_v62, %v211_v0 }
  0x45   :  { %v107_v3 = vmul.f32 %v103_v63, %v213_v1 }
  0x46   :  { %108 = vst [vmem:[#allocation5] sm:$0xff] %v106_v2 }
  0x47   :  { %109 = vst [vmem:[#allocation5 + $0x8] sm:$0xff] %v107_v3 }
  0x48   :  { %178 = shalt.err (!%p175_p9)
}
  0x49   :  { %121 = dma.vmem_to_hbm [thread:$0]  %s116_s13, 256, %s231_s1, [#allocation4], %s192_s9, %s192_s9, %s193_s10  }
  0x4a   :  { %189 = dma.done.wait [#allocation4], 256  }
  0x4b   :  { %190 = vsyncadd [#allocation4], 4294967040 }
  0x4c   :  { %125 = vsyncpa [#allocation3], 1 }
  0x4d   :  { %126 = vsyncpa [#allocation4], 1 }

</bundles_post_ra>
